<compile_context>
chip_gen: v7x
topology: tpu7x:2x2x1
jax: 0.10.0
libtpu: 0.0.40
codegen_flags: <defaults>
</compile_context>

<pallas_src>
import jax
import jax.numpy as jnp
import numpy as np
from jax.experimental import pallas as pl
from jax.experimental.pallas import tpu as pltpu

HIDDEN = 128


def _round_up(x, m):
    return ((x + m - 1) // m) * m


def _critic_kernel(s_ref, a_ref, w1s_ref, w1a_ref, b1_ref,
                   w2_ref, b2_ref, w3_ref, b3_ref, o_ref):
    # Activations arrive as f32 tiles; cast to bf16 for the MXU, accumulate f32.
    s = s_ref[...].astype(jnp.bfloat16)                               # [TB, Ds]
    a = a_ref[...].astype(jnp.bfloat16)                               # [TB, Da]

    # Layer 1: cat([state, action], 1) @ W1  ==  state @ W1_s + action @ W1_a
    h1 = (jnp.dot(s, w1s_ref[...], preferred_element_type=jnp.float32)
          + jnp.dot(a, w1a_ref[...], preferred_element_type=jnp.float32)
          + b1_ref[...])
    h1 = jnp.maximum(h1, 0.0)                                         # [TB, 128] f32

    # Layer 2: 128 -> 128 on the MXU (bf16 operands, f32 accumulation).
    h2 = jnp.dot(h1.astype(jnp.bfloat16), w2_ref[...],
                 preferred_element_type=jnp.float32) + b2_ref[...]
    h2 = jnp.maximum(h2, 0.0)                                         # [TB, 128] f32

    # Layer 3: 128 -> 1 as VPU multiply + lane reduction (skip the MXU),
    # b3 is a scalar read from SMEM.
    q = jnp.sum(h2 * w3_ref[...], axis=-1, keepdims=True) + b3_ref[0]  # [TB, 1]

    # Lane-dense store: broadcast q across all 128 lanes (full unmasked vst);
    # the wrapper slices column 0.
    o_ref[...] = jnp.broadcast_to(q, o_ref.shape)


def critic_forward(state, action, params, *, block_b=256):
    """Pallas equivalent of Critic.forward(state, action). Returns [B, 1] f32."""
    w1s, w1a, b1, w2, b2, w3, b3 = params

    state = state.astype(jnp.float32)
    action = action.astype(jnp.float32)
    B, Ds = state.shape
    Da = action.shape[1]

    # Batch tile: multiple of 8 sublanes; pad batch to a multiple of the tile.
    TB = block_b if B >= block_b else _round_up(B, 8)
    B_pad = _round_up(B, TB)
    if B_pad != B:
        pad = ((0, B_pad - B), (0, 0))
        state = jnp.pad(state, pad)
        action = jnp.pad(action, pad)

    grid = (B_pad // TB,)

    out = pl.pallas_call(
        _critic_kernel,
        out_shape=jax.ShapeDtypeStruct((B_pad, HIDDEN), jnp.float32),
        grid=grid,
        in_specs=[
            # batch-tiled activations (double-buffered by the pipeline)
            pl.BlockSpec((TB, Ds), lambda i: (i, 0)),
            pl.BlockSpec((TB, Da), lambda i: (i, 0)),
            # weights / biases: constant block index -> VMEM-resident
            pl.BlockSpec((Ds, HIDDEN), lambda i: (0, 0)),
            pl.BlockSpec((Da, HIDDEN), lambda i: (0, 0)),
            pl.BlockSpec((1, HIDDEN), lambda i: (0, 0)),
            pl.BlockSpec((HIDDEN, HIDDEN), lambda i: (0, 0)),
            pl.BlockSpec((1, HIDDEN), lambda i: (0, 0)),
            pl.BlockSpec((1, HIDDEN), lambda i: (0, 0)),
            # b3 scalar lives in SMEM
            pl.BlockSpec((1,), lambda i: (0,),
                         memory_space=pltpu.MemorySpace.SMEM),
        ],
        out_specs=pl.BlockSpec((TB, HIDDEN), lambda i: (i, 0)),
        compiler_params=pltpu.CompilerParams(
            dimension_semantics=("parallel",)),
    )(state, action, w1s, w1a, b1, w2, b2, w3, b3)

    return out[:B, :1]


def init_critic_params(key, state_dim, action_dim):
    """Deterministic init matching the PyTorch layer shapes.

    nn.Linear(in, out) -> weight [out, in], bias [out]. We store weights
    transposed as [in, out]; W1 is split into state/action halves; the MXU
    weights (W1_s, W1_a, W2) are stored bf16, W3/biases stay f32.
    """
    d_in = state_dim + action_dim

    def uniform(k, shape, fan_in):
        bound = 1.0 / np.sqrt(fan_in)  # PyTorch default Linear init bound
        return jax.random.uniform(k, shape, jnp.float32, -bound, bound)

    key, k1w, k1b, k2w, k2b, k3w, k3b = jax.random.split(key, 7)
    w1 = uniform(k1w, (d_in, HIDDEN), d_in)
    b1 = uniform(k1b, (1, HIDDEN), d_in)
    w2 = uniform(k2w, (HIDDEN, HIDDEN), HIDDEN)
    b2 = uniform(k2b, (1, HIDDEN), HIDDEN)
    w3 = uniform(k3w, (1, HIDDEN), HIDDEN)           # stored as a [1, 128] row
    b3 = uniform(k3b, (1,), HIDDEN)

    w1s = w1[:state_dim].astype(jnp.bfloat16)
    w1a = w1[state_dim:].astype(jnp.bfloat16)
    w2 = w2.astype(jnp.bfloat16)
    return (w1s, w1a, b1, w2, b2, w3, b3)


def critic_ref(state, action, params):
    """Pure-JAX f32 reference for correctness checking."""
    w1s, w1a, b1, w2, b2, w3, b3 = params
    s = state.astype(jnp.float32)
    a = action.astype(jnp.float32)
    h = jax.nn.relu(s @ w1s.astype(jnp.float32) + a @ w1a.astype(jnp.float32) + b1)
    h = jax.nn.relu(h @ w2.astype(jnp.float32) + b2)
    return jnp.sum(h * w3, axis=-1, keepdims=True) + b3[0]


if __name__ == "__main__":
    key = jax.random.PRNGKey(0)
    state_dim, action_dim, batch = 16, 8, 8

    k_params, k_state, k_action = jax.random.split(key, 3)
    params = init_critic_params(k_params, state_dim, action_dim)
    state = jax.random.normal(k_state, (batch, state_dim), jnp.float32)
    action = jax.random.normal(k_action, (batch, action_dim), jnp.float32)

    q = jax.block_until_ready(critic_forward(state, action, params))
    q_ref = jax.block_until_ready(critic_ref(state, action, params))

    # bf16 MXU operands with f32 accumulation -> loosened tolerance vs f32 ref.
    np.testing.assert_allclose(np.asarray(q), np.asarray(q_ref),
                               rtol=5e-2, atol=5e-2)

    assert q.shape == (batch, 1) and q.dtype == jnp.float32
    print("KERNEL_OK")
</pallas_src>

<mosaic_0001>
module attributes {stable_mosaic.version = 11 : i64} {
  func.func @_critic_kernel(%arg0: i32, %arg1: memref<8x16xf32, #tpu.memory_space<vmem>>, %arg2: memref<8x8xf32, #tpu.memory_space<vmem>>, %arg3: memref<16x128xbf16, #tpu.memory_space<vmem>>, %arg4: memref<8x128xbf16, #tpu.memory_space<vmem>>, %arg5: memref<1x128xf32, #tpu.memory_space<vmem>>, %arg6: memref<128x128xbf16, #tpu.memory_space<vmem>>, %arg7: memref<1x128xf32, #tpu.memory_space<vmem>>, %arg8: memref<1x128xf32, #tpu.memory_space<vmem>>, %arg9: memref<1xf32, #tpu.memory_space<smem>>, %arg10: memref<8x128xf32, #tpu.memory_space<vmem>>) attributes {dimension_semantics = [#tpu.dimension_semantics<parallel>], iteration_bounds = array<i64: 1>, scalar_prefetch = 0 : i64, scratch_operands = 0 : i64, tpu.core_type = #tpu.core_type<tc>, window_params = [{transform_indices = @transform_0, window_bounds = array<i64: 8, 16>}, {transform_indices = @transform_1, window_bounds = array<i64: 8, 8>}, {pipeline_mode = #tpu.pipeline_mode<synchronous>, transform_indices = @transform_2, window_bounds = array<i64: 16, 128>}, {pipeline_mode = #tpu.pipeline_mode<synchronous>, transform_indices = @transform_3, window_bounds = array<i64: 8, 128>}, {pipeline_mode = #tpu.pipeline_mode<synchronous>, transform_indices = @transform_4, window_bounds = array<i64: 1, 128>}, {pipeline_mode = #tpu.pipeline_mode<synchronous>, transform_indices = @transform_5, window_bounds = array<i64: 128, 128>}, {pipeline_mode = #tpu.pipeline_mode<synchronous>, transform_indices = @transform_6, window_bounds = array<i64: 1, 128>}, {pipeline_mode = #tpu.pipeline_mode<synchronous>, transform_indices = @transform_7, window_bounds = array<i64: 1, 128>}, {transform_indices = @transform_8, window_bounds = array<i64: 1>}, {transform_indices = @transform_9, window_bounds = array<i64: 8, 128>}]} {
    %c0 = arith.constant 0 : index
    %c0_0 = arith.constant 0 : index
    %0 = vector.load %arg1[%c0, %c0_0] : memref<8x16xf32, #tpu.memory_space<vmem>>, vector<8x16xf32>
    %1 = arith.truncf %0 : vector<8x16xf32> to vector<8x16xbf16>
    %c0_1 = arith.constant 0 : index
    %c0_2 = arith.constant 0 : index
    %2 = vector.load %arg2[%c0_1, %c0_2] : memref<8x8xf32, #tpu.memory_space<vmem>>, vector<8x8xf32>
    %3 = arith.truncf %2 : vector<8x8xf32> to vector<8x8xbf16>
    %c0_3 = arith.constant 0 : index
    %c0_4 = arith.constant 0 : index
    %4 = vector.load %arg3[%c0_3, %c0_4] : memref<16x128xbf16, #tpu.memory_space<vmem>>, vector<16x128xbf16>
    %cst = arith.constant dense<0.000000e+00> : vector<8x128xf32>
    %5 = tpu.matmul %1, %4, %cst {dimension_numbers = #tpu.dot_dimension_numbers<[1], [0], [0], [1], [0, 0, 1, 1], [], []>} : vector<8x16xbf16>, vector<16x128xbf16>, vector<8x128xf32> -> vector<8x128xf32>
    %c0_5 = arith.constant 0 : index
    %c0_6 = arith.constant 0 : index
    %6 = vector.load %arg4[%c0_5, %c0_6] : memref<8x128xbf16, #tpu.memory_space<vmem>>, vector<8x128xbf16>
    %cst_7 = arith.constant dense<0.000000e+00> : vector<8x128xf32>
    %7 = tpu.matmul %3, %6, %cst_7 {dimension_numbers = #tpu.dot_dimension_numbers<[1], [0], [0], [1], [0, 0, 1, 1], [], []>} : vector<8x8xbf16>, vector<8x128xbf16>, vector<8x128xf32> -> vector<8x128xf32>
    %8 = arith.addf %5, %7 : vector<8x128xf32>
    %c0_8 = arith.constant 0 : index
    %c0_9 = arith.constant 0 : index
    %9 = vector.load %arg5[%c0_8, %c0_9] : memref<1x128xf32, #tpu.memory_space<vmem>>, vector<1x128xf32>
    %10 = vector.broadcast %9 : vector<1x128xf32> to vector<8x128xf32>
    %11 = arith.addf %8, %10 : vector<8x128xf32>
    %cst_10 = arith.constant 0.000000e+00 : f32
    %12 = vector.broadcast %cst_10 : f32 to vector<8x128xf32>
    %13 = arith.maximumf %11, %12 : vector<8x128xf32>
    %14 = arith.truncf %13 : vector<8x128xf32> to vector<8x128xbf16>
    %c0_11 = arith.constant 0 : index
    %c0_12 = arith.constant 0 : index
    %15 = vector.load %arg6[%c0_11, %c0_12] : memref<128x128xbf16, #tpu.memory_space<vmem>>, vector<128x128xbf16>
    %cst_13 = arith.constant dense<0.000000e+00> : vector<8x128xf32>
    %16 = tpu.matmul %14, %15, %cst_13 {dimension_numbers = #tpu.dot_dimension_numbers<[1], [0], [0], [1], [0, 0, 1, 1], [], []>} : vector<8x128xbf16>, vector<128x128xbf16>, vector<8x128xf32> -> vector<8x128xf32>
    %c0_14 = arith.constant 0 : index
    %c0_15 = arith.constant 0 : index
    %17 = vector.load %arg7[%c0_14, %c0_15] : memref<1x128xf32, #tpu.memory_space<vmem>>, vector<1x128xf32>
    %18 = vector.broadcast %17 : vector<1x128xf32> to vector<8x128xf32>
    %19 = arith.addf %16, %18 : vector<8x128xf32>
    %cst_16 = arith.constant 0.000000e+00 : f32
    %20 = vector.broadcast %cst_16 : f32 to vector<8x128xf32>
    %21 = arith.maximumf %19, %20 : vector<8x128xf32>
    %c0_17 = arith.constant 0 : index
    %c0_18 = arith.constant 0 : index
    %22 = vector.load %arg8[%c0_17, %c0_18] : memref<1x128xf32, #tpu.memory_space<vmem>>, vector<1x128xf32>
    %23 = vector.broadcast %22 : vector<1x128xf32> to vector<8x128xf32>
    %24 = arith.mulf %21, %23 : vector<8x128xf32>
    %cst_19 = arith.constant dense<0.000000e+00> : vector<8xf32>
    %25 = vector.multi_reduction <add>, %24, %cst_19 [1] : vector<8x128xf32> to vector<8xf32>
    %26 = vector.shape_cast %25 : vector<8xf32> to vector<8x1xf32>
    %c0_20 = arith.constant 0 : index
    %27 = memref.load %arg9[%c0_20] : memref<1xf32, #tpu.memory_space<smem>>
    %28 = vector.broadcast %27 : f32 to vector<8x1xf32>
    %29 = arith.addf %26, %28 : vector<8x1xf32>
    %30 = vector.shape_cast %29 : vector<8x1xf32> to vector<8x1xf32>
    %31 = vector.broadcast %30 : vector<8x1xf32> to vector<8x128xf32>
    %c0_21 = arith.constant 0 : index
    %c0_22 = arith.constant 0 : index
    %32 = vector.load %arg10[%c0_21, %c0_22] : memref<8x128xf32, #tpu.memory_space<vmem>>, vector<8x128xf32>
    tpu.vector_store %arg10[%c0_21, %c0_22], %31 {strides = array<i32>} : memref<8x128xf32, #tpu.memory_space<vmem>>, vector<8x128xf32>,
    return
  }
  func.func @transform_0(%arg0: i32) -> (i32, i32) {
    %c0_i32 = arith.constant 0 : i32
    %c0_i32_0 = arith.constant 0 : i32
    return %arg0, %c0_i32 : i32, i32
  }
  func.func @transform_1(%arg0: i32) -> (i32, i32) {
    %c0_i32 = arith.constant 0 : i32
    %c0_i32_0 = arith.constant 0 : i32
    return %arg0, %c0_i32 : i32, i32
  }
  func.func @transform_2(%arg0: i32) -> (i32, i32) {
    %c0_i32 = arith.constant 0 : i32
    %c0_i32_0 = arith.constant 0 : i32
    %c0_i32_1 = arith.constant 0 : i32
    return %c0_i32, %c0_i32_0 : i32, i32
  }
  func.func @transform_3(%arg0: i32) -> (i32, i32) {
    %c0_i32 = arith.constant 0 : i32
    %c0_i32_0 = arith.constant 0 : i32
    %c0_i32_1 = arith.constant 0 : i32
    return %c0_i32, %c0_i32_0 : i32, i32
  }
  func.func @transform_4(%arg0: i32) -> (i32, i32) {
    %c0_i32 = arith.constant 0 : i32
    %c0_i32_0 = arith.constant 0 : i32
    %c0_i32_1 = arith.constant 0 : i32
    return %c0_i32, %c0_i32_0 : i32, i32
  }
  func.func @transform_5(%arg0: i32) -> (i32, i32) {
    %c0_i32 = arith.constant 0 : i32
    %c0_i32_0 = arith.constant 0 : i32
    %c0_i32_1 = arith.constant 0 : i32
    return %c0_i32, %c0_i32_0 : i32, i32
  }
  func.func @transform_6(%arg0: i32) -> (i32, i32) {
    %c0_i32 = arith.constant 0 : i32
    %c0_i32_0 = arith.constant 0 : i32
    %c0_i32_1 = arith.constant 0 : i32
    return %c0_i32, %c0_i32_0 : i32, i32
  }
  func.func @transform_7(%arg0: i32) -> (i32, i32) {
    %c0_i32 = arith.constant 0 : i32
    %c0_i32_0 = arith.constant 0 : i32
    %c0_i32_1 = arith.constant 0 : i32
    return %c0_i32, %c0_i32_0 : i32, i32
  }
  func.func @transform_8(%arg0: i32) -> i32 {
    %c0_i32 = arith.constant 0 : i32
    %c0_i32_0 = arith.constant 0 : i32
    return %c0_i32 : i32
  }
  func.func @transform_9(%arg0: i32) -> (i32, i32) {
    %c0_i32 = arith.constant 0 : i32
    %c0_i32_0 = arith.constant 0 : i32
    return %arg0, %c0_i32 : i32, i32
  }
}

</mosaic_0001>

<bundles_post_ra>
// kernel: tpu_custom_call.1
= control target key start
LH: loop header
LB: loop body
LE: loop exit
PB: predicated region body
PF: predicated region fallthrough
CT: control target
= control target key end

     0   :  { %15 = vsyncpa [#allocation4], 0  ;;  %s626_s0 = inlined_call_operand.hbm [shape: f32[8,16], index: 0, kind: input, shape index: {}]   ;;  %s627_s1 = inlined_call_operand.hbm [shape: f32[8,8], index: 1, kind: input, shape index: {}]   ;;  %s628_s2 = inlined_call_operand.vmem [shape: bf16[16,128], index: 2, kind: input, shape index: {}]   ;;  %s629_s3 = inlined_call_operand.vmem [shape: bf16[8,128], index: 3, kind: input, shape index: {}]   ;;  %s630_s4 = inlined_call_operand.vmem [shape: f32[1,128], index: 4, kind: input, shape index: {}]   ;;  %s631_s5 = inlined_call_operand.hbm [shape: bf16[128,128], index: 5, kind: input, shape index: {}]   ;;  %s632_s6 = inlined_call_operand.vmem [shape: f32[1,128], index: 6, kind: input, shape index: {}]   ;;  %s633_s7 = inlined_call_operand.vmem [shape: f32[1,128], index: 7, kind: input, shape index: {}]   ;;  %s634_s8 = inlined_call_operand.<no memory space> [shape: f32[1], index: 8, kind: input, shape index: {}]   ;;  %s635_s9 = inlined_call_operand.hbm [shape: f32[8,128], index: 9, kind: output, shape index: {}]  }
   0x1   :  { %16 = vsyncpa [#allocation7], 0 }
   0x2   :  { %17 = vsyncpa [#allocation5], 0  ;;  %s499_s30 = smov [#allocation6]   ;;  %s500_s11 = smov [#allocation3]  }
   0x3   :  { %s34_s10 = sshll.u32 %s499_s30, 4  ;;  %s24_s12 = sshll.u32 %s500_s11, 4  ;;  %s35_s10 = int_to_ptr.vmem [resolvable:$true] %s34_s10  ;;  %s25_s12 = int_to_ptr.vmem [resolvable:$true] %s24_s12 }
   0x4   :  { %s405_s15 = scalar_lea.hbm %s627_s1, 128 }
   0x5   :  { %p406_p0 = scmp.ne.s32.totalorder %s627_s1, %s405_s15  ;;  %p409_p1 = scmp.lt.u32.totalorder %s405_s15, %s627_s1 }
   0x7   :  { %p411_p2 = pnand %p409_p1, %p406_p0 }
   0x9   :  { %414 = shalt.err (!%p411_p2)
}
   0xa   :  { %s415_s20 = scalar_lea.vmem %s35_s10, 128  ;;  %p420_p4 = scmp.lt.s32.totalorder %s35_s10, %s35_s10 }
   0xb   :  { %p416_p3 = scmp.ne.s32.totalorder %s35_s10, %s415_s20  ;;  %p421_p5 = scmp.lt.s32.totalorder %s415_s20, %s415_s20 }
   0xd   :  { %p422_p6 = por %p421_p5, %p420_p4 }
   0xf   :  { %p423_p7 = pnand %p422_p6, %p416_p3 }
  0x11   :  { %426 = shalt.err (!%p423_p7)
}
  0x12   :  { %37 = dma.hbm_to_vmem [thread:$0]  %s627_s1, 128, %s35_s10, [#allocation7]  }
  0x13   :  { %s427_s25 = scalar_lea.hbm %s626_s0, 128 }
  0x14   :  { %p428_p8 = scmp.ne.s32.totalorder %s626_s0, %s427_s25  ;;  %p431_p9 = scmp.lt.u32.totalorder %s427_s25, %s626_s0 }
  0x16   :  { %p433_p10 = pnand %p431_p9, %p428_p8 }
  0x18   :  { %436 = shalt.err (!%p433_p10)
}
  0x19   :  { %s437_s30 = scalar_lea.vmem %s25_s12, 128  ;;  %p442_p12 = scmp.lt.s32.totalorder %s25_s12, %s25_s12 }
  0x1a   :  { %p438_p11 = scmp.ne.s32.totalorder %s25_s12, %s437_s30  ;;  %p443_p13 = scmp.lt.s32.totalorder %s437_s30, %s437_s30 }
  0x1c   :  { %p444_p0 = por %p443_p13, %p442_p12 }
  0x1e   :  { %p445_p1 = pnand %p444_p0, %p438_p11 }
  0x20   :  { %448 = shalt.err (!%p445_p1)
}
  0x21   :  { %27 = dma.hbm_to_vmem [thread:$0]  %s626_s0, 128, %s25_s12, [#allocation4]  }
  0x22   :  { %s501_s11 = smov [#allocation8]   ;;  %s449_s16 = scalar_lea.hbm %s631_s5, 1024 }
  0x23   :  { %s49_s13 = sshll.u32 %s501_s11, 4  ;;  %p450_p2 = scmp.ne.s32.totalorder %s631_s5, %s449_s16  ;;  %s50_s13 = int_to_ptr.vmem [resolvable:$true] %s49_s13 }
  0x24   :  { %p453_p3 = scmp.lt.u32.totalorder %s449_s16, %s631_s5 }
  0x26   :  { %p455_p4 = pnand %p453_p3, %p450_p2 }
  0x28   :  { %458 = shalt.err (!%p455_p4)
}
  0x29   :  { %s459_s21 = scalar_lea.vmem %s50_s13, 1024  ;;  %p464_p6 = scmp.lt.s32.totalorder %s50_s13, %s50_s13 }
  0x2a   :  { %p460_p5 = scmp.ne.s32.totalorder %s50_s13, %s459_s21  ;;  %p465_p7 = scmp.lt.s32.totalorder %s459_s21, %s459_s21 }
  0x2c   :  { %p466_p8 = por %p465_p7, %p464_p6 }
  0x2e   :  { %p467_p9 = pnand %p466_p8, %p460_p5 }
  0x30   :  { %470 = shalt.err (!%p467_p9)
}
  0x31   :  { %s502_s0 = smov 64   ;;  %s503_s12 = smov 4  }
  0x32   :  { %55 = dma.hbm_to_vmem [thread:$0]  %s631_s5, 1024, %s50_s13, [#allocation7], %s502_s0, %s502_s0, %s503_s12  }
  0x33   :  { %493 = dma.done.wait [#allocation4], 128  }
  0x34   :  { %494 = vsyncadd [#allocation4], 4294967168 }
  0x35   :  { %495 = dma.done.wait [#allocation7], 1152  }
  0x36   :  { %496 = vsyncadd [#allocation7], 4294966144  ;;  %v504_v0 = vmov 0.0   ;;  %vm505_vm0 = vmmov 0   ;;  %vm83_vm1 = vcmask 1043456   ;;  %v74_v2 = vld [vmem:[#allocation6] sm:$0xff]  ;;  %v310_v38 = vstv %s634_s8 }
  0x37   :  { %356 = vmatprep.subr.bf16.mxu1 %v504_v0  ;;  %358 = vmatprep.mubr.msk.bf16.mxu1 %vm505_vm0, %v504_v0  ;;  %v78_v1 = vld [vmem:[%s629_s3] sm:$0xf]  ;;  %v75_v4 = vpack.c.bf16 %v74_v2, %v74_v2  ;;  %vm79_vm2 = vcmask 64512   ;;  %v397_v6 = vld [vmem:[#allocation8] sm:$0xff]   ;;  %v398_v7 = vld [vmem:[#allocation8 + $0x8] sm:$0xff]   ;;  %vm133_vm3 = vcmask 130048  }
  0x38   :  { %368 = vmatprep.subr.bf16.mxu0 %v504_v0  ;;  %384 = vmatprep.mubr.msk.bf16.mxu0 %vm505_vm0, %v504_v0  ;;  %v85_v3 = vsel %vm83_vm1, %v78_v1, 0  ;;  %v396_v5 = vld [vmem:[%s628_s2] sm:$0xff]   ;;  %v400_v11 = vld [vmem:[#allocation8 + $0x18] sm:$0xff]   ;;  %v401_v12 = vld [vmem:[#allocation8 + $0x20] sm:$0xff]   ;;  %s506_s10 = smov [#allocation9]  }
  0x39   :  { %357 = vmatpush3.bf16.msra.mxu1 %v85_v3  ;;  %369 = vmatpush3.bf16.msra.mxu0 %v397_v6  ;;  %v72_v8 = vld [vmem:[#allocation3] sm:$0xff]  ;;  %v402_v13 = vld [vmem:[#allocation8 + $0x28] sm:$0xff]   ;;  %v404_v15 = vld [vmem:[#allocation8 + $0x38] sm:$0xff]   ;;  %s319_s11 = sshll.u32 %s506_s10, 4  ;;  %s320_s11 = int_to_ptr.vmem [resolvable:$true] %s319_s11 }
  0x3a   :  { %362 = vmatprep.subr.bf16.mxu1 %v504_v0  ;;  %370 = vmatprep.subr.bf16.mxu0 %v504_v0  ;;  %v399_v9 = vld [vmem:[#allocation8 + $0x10] sm:$0xff]   ;;  %v73_v10 = vpack.c.bf16 %v72_v8, %v72_v8  ;;  %p476_p11 = scmp.lt.s32.totalorder %s320_s11, %s320_s11 }
  0x3b   :  { %v403_v14 = vld [vmem:[#allocation8 + $0x30] sm:$0xff]  }
  0x3c   :  { %359 = vmatmul.mubr.msk.bf16.vlgmr.msra.gmra.mrb[0].mxu1 %vm79_vm2, %v75_v4  ;;  %v332_v21 = vld [vmem:[%s630_s4] ss:$0 sm:$0xff] }
  0x3d   :  { %363 = vmatpush3.bf16.msra.mxu1 %v396_v5  ;;  %364 = vmatprep.mubr.msk.bf16.mxu1 %vm505_vm0, %v504_v0  ;;  %v333_v29 = vld [vmem:[%s632_s6] ss:$0 sm:$0xff]  ;;  %s471_s6 = scalar_lea.vmem %s320_s11, 128 }
  0x3e   :  { %371 = vmatpush3.bf16.msra.mxu0 %v398_v7  ;;  %v342_v34 = vld [vmem:[%s633_s7] ss:$0 sm:$0xff]  ;;  %p472_p10 = scmp.ne.s32.totalorder %s320_s11, %s471_s6  ;;  %p477_p12 = scmp.lt.s32.totalorder %s471_s6, %s471_s6 }
  0x3f   :  { %372 = vmatprep.subr.bf16.mxu0 %v504_v0 }
  0x40   :  { %p478_p13 = por %p477_p12, %p476_p11 }
  0x42   :  { %373 = vmatpush3.bf16.msra.mxu0 %v399_v9  ;;  %p479_p0 = pnand %p478_p13, %p472_p10 }
  0x43   :  { %374 = vmatprep.subr.bf16.mxu0 %v504_v0 }
  0x44   :  { %365 = vmatmul.mubr.msk.bf16.vlgmr.msra.gmra.mrb[4].mxu1 %vm133_vm3, %v73_v10 }
  0x46   :  { %375 = vmatpush3.bf16.msra.mxu0 %v400_v11 }
  0x47   :  { %376 = vmatprep.subr.bf16.mxu0 %v504_v0 }
  0x4a   :  { %377 = vmatpush3.bf16.msra.mxu0 %v401_v12 }
  0x4b   :  { %378 = vmatprep.subr.bf16.mxu0 %v504_v0 }
  0x4e   :  { %379 = vmatpush3.bf16.msra.mxu0 %v402_v13 }
  0x4f   :  { %380 = vmatprep.subr.bf16.mxu0 %v504_v0 }
  0x52   :  { %381 = vmatpush3.bf16.msra.mxu0 %v403_v14 }
  0x53   :  { %382 = vmatprep.subr.bf16.mxu0 %v504_v0 }
  0x56   :  { %383 = vmatpush3.bf16.msra.mxu0 %v404_v15 }
 0x10f   :  { %v121_v16 = vpop.f32.mrb[0].mxu1 }
 0x110   :  { %v360_v17 = vpop.f32.mrb[1].mxu1 }
 0x111   :  { %v124_v18 = vpop.f32.mrb[2].mxu1 }
 0x112   :  { %v361_v19 = vpop.f32.mrb[3].mxu1 }
 0x117   :  { %v171_v20 = vpop.f32.mrb[4].mxu1 }
 0x118   :  { %v172_v22 = vadd.f32 %v171_v20, %v121_v16  ;;  %v366_v23 = vpop.f32.mrb[5].mxu1 }
 0x119   :  { %v174_v24 = vpop.f32.mrb[6].mxu1 }
 0x11a   :  { %v184_v25 = vadd.f32 %v332_v21, %v172_v22  ;;  %v367_v26 = vpop.f32.mrb[7].mxu1 }
 0x11c   :  { %v185_v27 = vmax.f32 %v184_v25, 0.0 }
 0x11e   :  { %v186_v28 = vpack.c.bf16 %v185_v27, %v185_v27 }
 0x120   :  { %385 = vmatmul.mubr.bf16.vlgmr.msra.gmra.mrb[0].mxu0 %v186_v28 }
 0x1f3   :  { %v292_v30 = vpop.f32.mrb[0].mxu0 }
 0x1f4   :  { %v293_v31 = vadd.f32 %v333_v29, %v292_v30  ;;  %v386_v32 = vpop.f32.mrb[1].mxu0 }
 0x1f5   :  { %v295_v33 = vpop.f32.mrb[2].mxu0 }
 0x1f6   :  { %v298_v35 = vmax.f32 %v293_v31, 0.0  ;;  %v387_v36 = vpop.f32.mrb[3].mxu0 }
 0x1f8   :  { %v306_v37 = vmul.f32 %v342_v34, %v298_v35 }
 0x1fa   :  { %307 = vadd.xlane.f32.xlu0 %v306_v37 }
 0x287   :  { %v308_v39 = vpop.xlane.xlu0 %307 }
 0x288   :  { %v311_v40 = vadd.f32 %v310_v38, %v308_v39 }
 0x28a   :  { %312 = vst [vmem:[#allocation9] sm:$0xff] %v311_v40 }
 0x28b   :  { %482 = shalt.err (!%p479_p0)
}
 0x28c   :  { %s483_s14 = scalar_lea.hbm %s635_s9, 128 }
 0x28d   :  { %p484_p1 = scmp.ne.s32.totalorder %s635_s9, %s483_s14  ;;  %p487_p2 = scmp.lt.u32.totalorder %s483_s14, %s635_s9 }
 0x28f   :  { %p489_p3 = pnand %p487_p2, %p484_p1 }
 0x291   :  { %492 = shalt.err (!%p489_p3)
}
 0x292   :  { %322 = dma.vmem_to_hbm [thread:$0]  %s320_s11, 128, %s635_s9, [#allocation5]  }
 0x293   :  { %497 = dma.done.wait [#allocation5], 128  }
 0x294   :  { %498 = vsyncadd [#allocation5], 4294967168 }
 0x295   :  { %326 = vsyncpa [#allocation4], 1 }
 0x296   :  { %327 = vsyncpa [#allocation7], 1 }
 0x297   :  { %328 = vsyncpa [#allocation5], 1 }

</bundles_post_ra>
